<compile_context>
chip_gen: v7x
topology: tpu7x:2x2x1
jax: 0.10.0
libtpu: 0.0.40
codegen_flags: <defaults>
</compile_context>

<pallas_src>
import functools

import jax
import jax.numpy as jnp
from jax.experimental import pallas as pl
from jax.experimental.pallas import tpu as pltpu

BN_EPS = 1e-5


# --------------------------------------------------------------------------
# Tile-size derivation (per TPU generation)
# --------------------------------------------------------------------------
def _vmem_capacity_bytes() -> int:
    """Physical VMEM of the current chip; conservative fallback = 64 MiB (v7x)."""
    try:
        cap = getattr(pltpu.get_tpu_info(), "vmem_capacity_bytes", None)
        if cap:
            return int(cap)
    except Exception:
        pass
    return 64 * 1024 * 1024


def _sublane_multiple(x_bytes: int) -> int:
    """Native sublane tile multiple: 8 for f32, 16 for bf16, 32 for int8/fp8."""
    return max(8, 32 // int(x_bytes))


def _pick_row_tile(bc: int, max_rows: int, mult: int) -> int:
    """Largest divisor of bc that is a multiple of `mult`, <= max_rows, and
    (when possible) <= bc // 2 so the 'parallel' row axis has >= 2 programs
    (v7x megacore: 2 TensorCores per chip)."""
    cap = min(max_rows, bc // 2) if bc >= 2 * mult else min(max_rows, bc)
    cap = (cap // mult) * mult
    for t in range(cap, 0, -mult):
        if bc % t == 0:
            return t
    # No aligned divisor: fall back to the full dim (block == full array dim
    # is always legal regardless of the sublane multiple).
    return bc


def _pick_lane_tile(hw: int, tr: int, budget_bytes: int, x_bytes: int, lane_cap) -> int:
    """HW tile: full dim if it fits the budget, else a multiple of 128 within budget."""
    # Per (row, lane) element cost: double-buffered input only — the avg/max
    # accumulators are (tr, 1) and negligible.
    per_elem = 2 * x_bytes
    max_lanes = max(128, budget_bytes // (per_elem * tr))
    if lane_cap is not None:
        max_lanes = min(max_lanes, max(128, int(lane_cap)))
    if hw <= max_lanes:
        return hw  # block dim == full array dim: no 128-divisibility requirement
    return max(128, (max_lanes // 128) * 128)


# --------------------------------------------------------------------------
# Kernel A: streamed adaptive avg + max pooling over the spatial axis
# --------------------------------------------------------------------------
def _pooling_kernel(x_ref, avg_ref, max_ref, *, hw, thw, inv_hw):
    s = pl.program_id(1)                    # HW-reduction step (innermost, 'arbitrary')
    last = pl.num_programs(1) - 1

    @pl.when(s == 0)
    def _init():
        avg_ref[...] = jnp.zeros_like(avg_ref)           # running sum
        max_ref[...] = jnp.full_like(max_ref, -jnp.inf)   # running max

    x = x_ref[...].astype(jnp.float32)       # (tr, thw); bf16 inputs promoted here

    def _accumulate(x_sum, x_max):
        # Per-step cross-lane reduce lands on the XLU (own VLIW slot): free in
        # an HBM-bound kernel.  Accumulators are (tr, 1) resident output blocks.
        avg_ref[...] = avg_ref[...] + jnp.sum(x_sum, axis=-1, keepdims=True)
        max_ref[...] = jnp.maximum(max_ref[...], jnp.max(x_max, axis=-1, keepdims=True))

    if hw % thw != 0:
        # Only the last HW step sees a partial tile: keep the mask off the
        # fast path for all full steps.
        @pl.when(s < last)
        def _full():
            _accumulate(x, x)

        @pl.when(s == last)
        def _partial():
            lane = jax.lax.broadcasted_iota(jnp.int32, x.shape, 1)
            valid = (s * thw + lane) < hw
            _accumulate(jnp.where(valid, x, 0.0), jnp.where(valid, x, -jnp.inf))
    else:
        _accumulate(x, x)

    @pl.when(s == last)
    def _finalize():
        avg_ref[...] = avg_ref[...] * inv_hw


def _pooled_avg_max(x2d, hw, row_tile_cap=None, lane_tile_cap=None):
    """x2d: (B*C[, padded], H*W) -> (avg, max) each of shape (rows, 1), float32."""
    bc = x2d.shape[0]
    x_bytes = jnp.dtype(x2d.dtype).itemsize
    mult = _sublane_multiple(x_bytes)

    vmem_cap = _vmem_capacity_bytes()
    # v6e (>= 96 MiB VMEM): larger working-set budget; v7x/v5e stay at 1/4.
    budget = vmem_cap // 3 if vmem_cap >= (96 << 20) else vmem_cap // 4

    max_rows = 1024 if row_tile_cap is None else max(mult, min(1024, int(row_tile_cap)))
    max_rows = max(mult, (max_rows // mult) * mult)
    tr = _pick_row_tile(bc, max_rows, mult)
    thw = _pick_lane_tile(hw, tr, budget, x_bytes, lane_tile_cap)

    grid = (pl.cdiv(bc, tr), pl.cdiv(hw, thw))

    kernel = functools.partial(_pooling_kernel, hw=hw, thw=thw, inv_hw=1.0 / float(hw))

    avg, mx = pl.pallas_call(
        kernel,
        out_shape=(
            jax.ShapeDtypeStruct((bc, 1), jnp.float32),
            jax.ShapeDtypeStruct((bc, 1), jnp.float32),
        ),
        grid=grid,
        in_specs=[pl.BlockSpec((tr, thw), lambda r, s: (r, s))],
        out_specs=(
            pl.BlockSpec((tr, 1), lambda r, s: (r, 0)),
            pl.BlockSpec((tr, 1), lambda r, s: (r, 0)),
        ),
        compiler_params=pltpu.CompilerParams(
            dimension_semantics=("parallel", "arbitrary"),
            vmem_limit_bytes=int(min(vmem_cap, budget * 2)),
        ),
    )(x2d)
    return avg, mx


# --------------------------------------------------------------------------
# Kernel B: shared MLP (fc2∘relu∘fc1) on avg & max paths, sigmoid, BatchNorm
# --------------------------------------------------------------------------
def _mlp_bn_kernel(avg_ref, max_ref, w1t_ref, w2t_ref, gamma_ref, beta_ref, o_ref):
    w1t = w1t_ref[...]   # (C, C//8)
    w2t = w2t_ref[...]   # (C//8, C)

    def mlp(v):
        h = jnp.maximum(jnp.dot(v, w1t, preferred_element_type=jnp.float32), 0.0)
        return jnp.dot(h, w2t, preferred_element_type=jnp.float32)

    out = jax.nn.sigmoid(mlp(avg_ref[...]) + mlp(max_ref[...]))   # (B, C)

    # BatchNorm2d, training-mode batch statistics (H = W = 1 after pooling, so
    # the reduction is over the batch dimension only; biased variance).
    mean = jnp.mean(out, axis=0, keepdims=True)
    var = jnp.mean(jnp.square(out - mean), axis=0, keepdims=True)
    norm = (out - mean) * jax.lax.rsqrt(var + BN_EPS)
    o_ref[...] = gamma_ref[...] * norm + beta_ref[...]


# --------------------------------------------------------------------------
# Public wrapper
# --------------------------------------------------------------------------
def prepare_channel_attention_params(w1, w2, gamma, beta):
    """One-time parameter prep (transpose/cast/reshape done outside the hot path).

    w1: fc1 1x1-conv weight squeezed to (C//8, C); w2: fc2 weight (C, C//8).
    gamma/beta: BatchNorm2d weight/bias, shape (C,).
    """
    C = w2.shape[0]
    w1t = jnp.transpose(w1).astype(jnp.float32)     # (C, C//8)
    w2t = jnp.transpose(w2).astype(jnp.float32)     # (C//8, C)
    gamma2 = gamma.reshape(1, C).astype(jnp.float32)
    beta2 = beta.reshape(1, C).astype(jnp.float32)
    return (w1t, w2t, gamma2, beta2)


def channel_attention(x, params, *, row_tile_cap=None, lane_tile_cap=None):
    """x: (B, C, H, W) NCHW (f32 or bf16). Returns (B, C, 1, 1) like the PyTorch module."""
    w1t, w2t, gamma2, beta2 = params
    B, C, H, W = x.shape
    hw = H * W
    bc = B * C
    mult = _sublane_multiple(jnp.dtype(x.dtype).itemsize)

    # Streamed pooling over a dense (B*C, H*W) view; pad rows to the native
    # sublane multiple if needed (keeps bf16/int8 tiles layout-aligned).
    x2d = x.reshape(bc, hw)
    pad = (-bc) % mult
    if pad:
        x2d = jnp.pad(x2d, ((0, pad), (0, 0)))

    avg_flat, max_flat = _pooled_avg_max(
        x2d, hw, row_tile_cap=row_tile_cap, lane_tile_cap=lane_tile_cap
    )
    if pad:
        avg_flat = avg_flat[:bc]
        max_flat = max_flat[:bc]

    avg2d = avg_flat.reshape(B, C)
    max2d = max_flat.reshape(B, C)

    out = pl.pallas_call(
        _mlp_bn_kernel,
        out_shape=jax.ShapeDtypeStruct((B, C), jnp.float32),
        in_specs=[pl.BlockSpec(memory_space=pltpu.MemorySpace.VMEM)] * 6,
        out_specs=pl.BlockSpec(memory_space=pltpu.MemorySpace.VMEM),
    )(avg2d, max2d, w1t, w2t, gamma2, beta2)

    return out.reshape(B, C, 1, 1)


# --------------------------------------------------------------------------
# Pure-JAX reference (correctness sanity check)
# --------------------------------------------------------------------------
def channel_attention_ref(x, w1, w2, gamma, beta):
    B, C, H, W = x.shape
    xf = x.astype(jnp.float32)
    avg = jnp.mean(xf, axis=(2, 3))
    mx = jnp.max(xf, axis=(2, 3))

    def mlp(v):
        return jnp.maximum(v @ w1.T, 0.0) @ w2.T

    out = jax.nn.sigmoid(mlp(avg) + mlp(mx))
    mean = jnp.mean(out, axis=0, keepdims=True)
    var = jnp.mean((out - mean) ** 2, axis=0, keepdims=True)
    out = gamma[None, :] * (out - mean) * jax.lax.rsqrt(var + BN_EPS) + beta[None, :]
    return out.reshape(B, C, 1, 1)


if __name__ == "__main__":
    key = jax.random.PRNGKey(0)
    kx, k1, k2, kx2 = jax.random.split(key, 4)

    B, C = 2, 16                       # in_planes = 16 -> hidden = in_planes // 8 = 2
    # Deterministic synthetic parameters (conv weights squeezed from (O, I, 1, 1)).
    w1 = jax.random.normal(k1, (C // 8, C), dtype=jnp.float32) * (1.0 / jnp.sqrt(C))
    w2 = jax.random.normal(k2, (C, C // 8), dtype=jnp.float32) * (1.0 / jnp.sqrt(C // 8))
    gamma = jnp.ones((C,), dtype=jnp.float32)   # BatchNorm2d default weight
    beta = jnp.zeros((C,), dtype=jnp.float32)   # BatchNorm2d default bias

    params = prepare_channel_attention_params(w1, w2, gamma, beta)
    ca_fn = jax.jit(channel_attention, static_argnames=("row_tile_cap", "lane_tile_cap"))

    # Case 1: small shape, single-HW-tile fast path (row axis split for megacore).
    x = jax.random.normal(kx, (B, C, 16, 16), dtype=jnp.float32)
    out = ca_fn(x, params)
    jax.block_until_ready(out)
    ref = channel_attention_ref(x, w1, w2, gamma, beta)
    assert out.shape == (B, C, 1, 1)
    assert jnp.allclose(out, ref, atol=1e-4, rtol=1e-4), "case 1 mismatch vs JAX reference"

    # Case 2: force the gridded streaming-reduction path (multiple row tiles,
    # multiple HW tiles with a masked partial last tile: 48*48 = 2304 = 4*512 + 256).
    x2 = jax.random.normal(kx2, (B, C, 48, 48), dtype=jnp.float32)
    out2 = ca_fn(x2, params, row_tile_cap=8, lane_tile_cap=512)
    jax.block_until_ready(out2)
    ref2 = channel_attention_ref(x2, w1, w2, gamma, beta)
    assert out2.shape == (B, C, 1, 1)
    assert jnp.allclose(out2, ref2, atol=1e-4, rtol=1e-4), "case 2 mismatch vs JAX reference"

    print("KERNEL_OK")
</pallas_src>

<mosaic_0001>
module attributes {stable_mosaic.version = 11 : i64} {
  func.func @_pooling_kernel(%arg0: i32, %arg1: i32, %arg2: memref<16x256xf32, #tpu.memory_space<vmem>>, %arg3: memref<16x1xf32, #tpu.memory_space<vmem>>, %arg4: memref<16x1xf32, #tpu.memory_space<vmem>>) attributes {dimension_semantics = [#tpu.dimension_semantics<parallel>, #tpu.dimension_semantics<arbitrary>], iteration_bounds = array<i64: 2, 1>, scalar_prefetch = 0 : i64, scratch_operands = 0 : i64, tpu.core_type = #tpu.core_type<tc>, window_params = [{transform_indices = @transform_0, window_bounds = array<i64: 16, 256>}, {transform_indices = @transform_1, window_bounds = array<i64: 16, 1>}, {transform_indices = @transform_2, window_bounds = array<i64: 16, 1>}]} {
    %c0_i32 = arith.constant 0 : i32
    %0 = arith.cmpi eq, %arg1, %c0_i32 : i32
    %1 = arith.extui %0 : i1 to i32
    %c0_i32_0 = arith.constant 0 : i32
    %2 = arith.cmpi ne, %1, %c0_i32_0 : i32
    scf.if %2 {
      %cst_13 = arith.constant 0.000000e+00 : f32
      %17 = vector.broadcast %cst_13 : f32 to vector<16x1xf32>
      %c0_14 = arith.constant 0 : index
      %c0_15 = arith.constant 0 : index
      %18 = vector.load %arg3[%c0_14, %c0_15] : memref<16x1xf32, #tpu.memory_space<vmem>>, vector<16x1xf32>
      tpu.vector_store %arg3[%c0_14, %c0_15], %17 {strides = array<i32>} : memref<16x1xf32, #tpu.memory_space<vmem>>, vector<16x1xf32>,
      %cst_16 = arith.constant 0xFF800000 : f32
      %19 = vector.broadcast %cst_16 : f32 to vector<16x1xf32>
      %c0_17 = arith.constant 0 : index
      %c0_18 = arith.constant 0 : index
      %20 = vector.load %arg4[%c0_17, %c0_18] : memref<16x1xf32, #tpu.memory_space<vmem>>, vector<16x1xf32>
      tpu.vector_store %arg4[%c0_17, %c0_18], %19 {strides = array<i32>} : memref<16x1xf32, #tpu.memory_space<vmem>>, vector<16x1xf32>,
    } else {
    }
    %c0 = arith.constant 0 : index
    %c0_1 = arith.constant 0 : index
    %3 = vector.load %arg2[%c0, %c0_1] : memref<16x256xf32, #tpu.memory_space<vmem>>, vector<16x256xf32>
    %c0_2 = arith.constant 0 : index
    %c0_3 = arith.constant 0 : index
    %4 = vector.load %arg3[%c0_2, %c0_3] : memref<16x1xf32, #tpu.memory_space<vmem>>, vector<16x1xf32>
    %cst = arith.constant dense<0.000000e+00> : vector<16xf32>
    %5 = vector.multi_reduction <add>, %3, %cst [1] : vector<16x256xf32> to vector<16xf32>
    %6 = vector.shape_cast %5 : vector<16xf32> to vector<16x1xf32>
    %7 = arith.addf %4, %6 : vector<16x1xf32>
    %c0_4 = arith.constant 0 : index
    %c0_5 = arith.constant 0 : index
    %8 = vector.load %arg3[%c0_4, %c0_5] : memref<16x1xf32, #tpu.memory_space<vmem>>, vector<16x1xf32>
    tpu.vector_store %arg3[%c0_4, %c0_5], %7 {strides = array<i32>} : memref<16x1xf32, #tpu.memory_space<vmem>>, vector<16x1xf32>,
    %c0_6 = arith.constant 0 : index
    %c0_7 = arith.constant 0 : index
    %9 = vector.load %arg4[%c0_6, %c0_7] : memref<16x1xf32, #tpu.memory_space<vmem>>, vector<16x1xf32>
    %cst_8 = arith.constant dense<0xFF800000> : vector<16xf32>
    %10 = vector.multi_reduction <maximumf>, %3, %cst_8 [1] : vector<16x256xf32> to vector<16xf32>
    %11 = vector.shape_cast %10 : vector<16xf32> to vector<16x1xf32>
    %12 = arith.maximumf %9, %11 : vector<16x1xf32>
    %c0_9 = arith.constant 0 : index
    %c0_10 = arith.constant 0 : index
    %13 = vector.load %arg4[%c0_9, %c0_10] : memref<16x1xf32, #tpu.memory_space<vmem>>, vector<16x1xf32>
    tpu.vector_store %arg4[%c0_9, %c0_10], %12 {strides = array<i32>} : memref<16x1xf32, #tpu.memory_space<vmem>>, vector<16x1xf32>,
    %c0_i32_11 = arith.constant 0 : i32
    %14 = arith.cmpi eq, %arg1, %c0_i32_11 : i32
    %15 = arith.extui %14 : i1 to i32
    %c0_i32_12 = arith.constant 0 : i32
    %16 = arith.cmpi ne, %15, %c0_i32_12 : i32
    scf.if %16 {
      %c0_13 = arith.constant 0 : index
      %c0_14 = arith.constant 0 : index
      %17 = vector.load %arg3[%c0_13, %c0_14] : memref<16x1xf32, #tpu.memory_space<vmem>>, vector<16x1xf32>
      %cst_15 = arith.constant 3.906250e-03 : f32
      %18 = vector.broadcast %cst_15 : f32 to vector<16x1xf32>
      %19 = arith.mulf %17, %18 : vector<16x1xf32>
      %c0_16 = arith.constant 0 : index
      %c0_17 = arith.constant 0 : index
      %20 = vector.load %arg3[%c0_16, %c0_17] : memref<16x1xf32, #tpu.memory_space<vmem>>, vector<16x1xf32>
      tpu.vector_store %arg3[%c0_16, %c0_17], %19 {strides = array<i32>} : memref<16x1xf32, #tpu.memory_space<vmem>>, vector<16x1xf32>,
    } else {
    }
    return
  }
  func.func @transform_0(%arg0: i32, %arg1: i32) -> (i32, i32) {
    %c0_i32 = arith.constant 0 : i32
    return %arg0, %arg1 : i32, i32
  }
  func.func @transform_1(%arg0: i32, %arg1: i32) -> (i32, i32) {
    %c0_i32 = arith.constant 0 : i32
    %c0_i32_0 = arith.constant 0 : i32
    return %arg0, %c0_i32 : i32, i32
  }
  func.func @transform_2(%arg0: i32, %arg1: i32) -> (i32, i32) {
    %c0_i32 = arith.constant 0 : i32
    %c0_i32_0 = arith.constant 0 : i32
    return %arg0, %c0_i32 : i32, i32
  }
}

module attributes {stable_mosaic.version = 11 : i64} {
  func.func @_mlp_bn_kernel(%arg0: memref<2x16xf32, #tpu.memory_space<vmem>>, %arg1: memref<2x16xf32, #tpu.memory_space<vmem>>, %arg2: memref<16x2xf32, #tpu.memory_space<vmem>>, %arg3: memref<2x16xf32, #tpu.memory_space<vmem>>, %arg4: memref<1x16xf32, #tpu.memory_space<vmem>>, %arg5: memref<1x16xf32, #tpu.memory_space<vmem>>, %arg6: memref<2x16xf32, #tpu.memory_space<vmem>>) attributes {dimension_semantics = [], scalar_prefetch = 0 : i64, scratch_operands = 0 : i64, tpu.core_type = #tpu.core_type<tc>} {
    %c0 = arith.constant 0 : index
    %c0_0 = arith.constant 0 : index
    %0 = vector.load %arg2[%c0, %c0_0] : memref<16x2xf32, #tpu.memory_space<vmem>>, vector<16x2xf32>
    %c0_1 = arith.constant 0 : index
    %c0_2 = arith.constant 0 : index
    %1 = vector.load %arg3[%c0_1, %c0_2] : memref<2x16xf32, #tpu.memory_space<vmem>>, vector<2x16xf32>
    %c0_3 = arith.constant 0 : index
    %c0_4 = arith.constant 0 : index
    %2 = vector.load %arg0[%c0_3, %c0_4] : memref<2x16xf32, #tpu.memory_space<vmem>>, vector<2x16xf32>
    %cst = arith.constant dense<0.000000e+00> : vector<2x2xf32>
    %3 = tpu.matmul %2, %0, %cst {dimension_numbers = #tpu.dot_dimension_numbers<[1], [0], [0], [1], [0, 0, 1, 1], [], []>} : vector<2x16xf32>, vector<16x2xf32>, vector<2x2xf32> -> vector<2x2xf32>
    %cst_5 = arith.constant 0.000000e+00 : f32
    %4 = vector.broadcast %cst_5 : f32 to vector<2x2xf32>
    %5 = arith.maximumf %3, %4 : vector<2x2xf32>
    %cst_6 = arith.constant dense<0.000000e+00> : vector<2x16xf32>
    %6 = tpu.matmul %5, %1, %cst_6 {dimension_numbers = #tpu.dot_dimension_numbers<[1], [0], [0], [1], [0, 0, 1, 1], [], []>} : vector<2x2xf32>, vector<2x16xf32>, vector<2x16xf32> -> vector<2x16xf32>
    %c0_7 = arith.constant 0 : index
    %c0_8 = arith.constant 0 : index
    %7 = vector.load %arg1[%c0_7, %c0_8] : memref<2x16xf32, #tpu.memory_space<vmem>>, vector<2x16xf32>
    %cst_9 = arith.constant dense<0.000000e+00> : vector<2x2xf32>
    %8 = tpu.matmul %7, %0, %cst_9 {dimension_numbers = #tpu.dot_dimension_numbers<[1], [0], [0], [1], [0, 0, 1, 1], [], []>} : vector<2x16xf32>, vector<16x2xf32>, vector<2x2xf32> -> vector<2x2xf32>
    %cst_10 = arith.constant 0.000000e+00 : f32
    %9 = vector.broadcast %cst_10 : f32 to vector<2x2xf32>
    %10 = arith.maximumf %8, %9 : vector<2x2xf32>
    %cst_11 = arith.constant dense<0.000000e+00> : vector<2x16xf32>
    %11 = tpu.matmul %10, %1, %cst_11 {dimension_numbers = #tpu.dot_dimension_numbers<[1], [0], [0], [1], [0, 0, 1, 1], [], []>} : vector<2x2xf32>, vector<2x16xf32>, vector<2x16xf32> -> vector<2x16xf32>
    %12 = arith.addf %6, %11 : vector<2x16xf32>
    %13 = arith.negf %12 : vector<2x16xf32>
    %14 = math.exp %13 : vector<2x16xf32>
    %cst_12 = arith.constant 1.000000e+00 : f32
    %15 = vector.broadcast %cst_12 : f32 to vector<2x16xf32>
    %16 = arith.addf %15, %14 : vector<2x16xf32>
    %17 = arith.divf %15, %16 : vector<2x16xf32>
    %cst_13 = arith.constant dense<0.000000e+00> : vector<16xf32>
    %18 = vector.multi_reduction <add>, %17, %cst_13 [0] : vector<2x16xf32> to vector<16xf32>
    %19 = vector.shape_cast %18 : vector<16xf32> to vector<1x16xf32>
    %cst_14 = arith.constant 2.000000e+00 : f32
    %20 = vector.broadcast %cst_14 : f32 to vector<1x16xf32>
    %21 = arith.divf %19, %20 : vector<1x16xf32>
    %22 = vector.broadcast %21 : vector<1x16xf32> to vector<2x16xf32>
    %23 = arith.subf %17, %22 : vector<2x16xf32>
    %24 = arith.mulf %23, %23 : vector<2x16xf32>
    %cst_15 = arith.constant dense<0.000000e+00> : vector<16xf32>
    %25 = vector.multi_reduction <add>, %24, %cst_15 [0] : vector<2x16xf32> to vector<16xf32>
    %26 = vector.shape_cast %25 : vector<16xf32> to vector<1x16xf32>
    %cst_16 = arith.constant 2.000000e+00 : f32
    %27 = vector.broadcast %cst_16 : f32 to vector<1x16xf32>
    %28 = arith.divf %26, %27 : vector<1x16xf32>
    %29 = vector.broadcast %21 : vector<1x16xf32> to vector<2x16xf32>
    %30 = arith.subf %17, %29 : vector<2x16xf32>
    %cst_17 = arith.constant 9.99999974E-6 : f32
    %31 = vector.broadcast %cst_17 : f32 to vector<1x16xf32>
    %32 = arith.addf %28, %31 : vector<1x16xf32>
    %33 = math.rsqrt %32 : vector<1x16xf32>
    %34 = vector.broadcast %33 : vector<1x16xf32> to vector<2x16xf32>
    %35 = arith.mulf %30, %34 : vector<2x16xf32>
    %c0_18 = arith.constant 0 : index
    %c0_19 = arith.constant 0 : index
    %36 = vector.load %arg4[%c0_18, %c0_19] : memref<1x16xf32, #tpu.memory_space<vmem>>, vector<1x16xf32>
    %37 = vector.broadcast %36 : vector<1x16xf32> to vector<2x16xf32>
    %38 = arith.mulf %37, %35 : vector<2x16xf32>
    %c0_20 = arith.constant 0 : index
    %c0_21 = arith.constant 0 : index
    %39 = vector.load %arg5[%c0_20, %c0_21] : memref<1x16xf32, #tpu.memory_space<vmem>>, vector<1x16xf32>
    %40 = vector.broadcast %39 : vector<1x16xf32> to vector<2x16xf32>
    %41 = arith.addf %38, %40 : vector<2x16xf32>
    %c0_22 = arith.constant 0 : index
    %c0_23 = arith.constant 0 : index
    %42 = vector.load %arg6[%c0_22, %c0_23] : memref<2x16xf32, #tpu.memory_space<vmem>>, vector<2x16xf32>
    tpu.vector_store %arg6[%c0_22, %c0_23], %41 {strides = array<i32>} : memref<2x16xf32, #tpu.memory_space<vmem>>, vector<2x16xf32>,
    return
  }
}

</mosaic_0001>

<bundles_post_ra>
// kernel: channel_attention.2
= control target key start
LH: loop header
LB: loop body
LE: loop exit
PB: predicated region body
PF: predicated region fallthrough
CT: control target
= control target key end

     0   :  { %s426_s9 = smov 0   ;;  %s428_s10 = smov 0   ;;  %s492_s0 = inlined_call_operand.vmem [shape: f32[32,256], index: 0, kind: input, shape index: {}]   ;;  %s493_s1 = inlined_call_operand.vmem [shape: f32[32,1], index: 1, kind: output, shape index: {0}]   ;;  %s494_s2 = inlined_call_operand.vmem [shape: f32[32,1], index: 2, kind: output, shape index: {1}]  }
   0x1   :  { %s430_s11 = smov 0  }
   0x2 LB: > { %s25_s12 = sadd.s32 1, %s403_s10  ;;  %p348_p0 = scmp.ge.s32.totalorder %s407_s11, 1  ;;  %s407_s11 = sphi %s430_s11, %s13_s11   ;;  %s403_s10 = sphi %s428_s10, %s496_s10   ;;  %s399_s9 = sphi %s426_s9, %s495_s9  }
   0x3   : > { %p27_p1 = scmp.ge.s32.totalorder %s25_s12, 2  ;;  %p136_p2 = scmp.lt.s32.totalorder %s407_s11, 3 }
   0x5   : > { %s498_s12 = smov (%p27_p1, %s25_s12), 0  ;;  %p137_p3 = pnand %p348_p0, %p136_p2 }
   0x6   : > { %s349_s13 = sshll.u32 (!%p137_p3), %s399_s9, 1  ;;  %vm196_vm0 = vcmask (!%p137_p3), 7168   ;;  %v409_v3 = vmov (!%p137_p3), 0.0   ;;  %v410_v4 = vmov (!%p137_p3), -inf  }
   0x7   : > { %140 = sbr.rel (%p137_p3) target bundleno = 179 (0xb3), region = 24  ;;  %p170_p4 = scmp.lt.s32.totalorder (!%p137_p3), %s349_s13, 3 }
   0xe   : > { %s500_s13 = smov (!%p170_p4, %s349_s13), 3 }
   0xf   : > { %s358_s14 = sshll.u32 %s500_s13, 4  ;;  %s353_s15 = sshll.u32 %s500_s13, 3 }
  0x10   : > { %s177_s18 = scalar_lea.vmem %s492_s0, %s358_s14  ;;  %s450_s21 = scalar_lea.vmem %s493_s1, %s353_s15 }
  0x11   : > { %s455_s24 = scalar_lea.vmem %s494_s2, %s353_s15  ;;  %v201_v0 = vld [vmem:[%s177_s18] sm:$0xff]  ;;  %v202_v1 = vld [vmem:[%s177_s18 + $0x8] sm:$0xff]  ;;  %v203_v2 = vld [vmem:[%s177_s18 + $0x10] sm:$0xff]  ;;  %197 = vst.msk [vmem:[%s450_s21] sm:$0xff] %vm196_vm0, %v409_v3 }
  0x12   : > { %199 = vst.msk [vmem:[%s455_s24] sm:$0xff] %vm196_vm0, %v410_v4  ;;  %v207_v5 = vadd.f32 %v202_v1, %v201_v0  ;;  %v204_v6 = vld [vmem:[%s177_s18 + $0x18] sm:$0xff]  ;;  %v220_v7 = vmax.f32 %v201_v0, %v202_v1  ;;  %198 = vst.msk [vmem:[%s450_s21 + $0x8] sm:$0xff] %vm196_vm0, %v409_v3 }
  0x13   : > { %200 = vst.msk [vmem:[%s455_s24 + $0x8] sm:$0xff] %vm196_vm0, %v410_v4  ;;  %v210_v8 = vadd.f32 %v204_v6, %v203_v2  ;;  %v223_v9 = vmax.f32 %v203_v2, %v204_v6 }
  0x14   : > { %208 = vadd.xlane.f32.xlu0 %v207_v5  ;;  %221 = vmax.xlane.f32.xlu1 %v220_v7 }
  0x18   : > { %211 = vadd.xlane.f32.xlu0 %v210_v8  ;;  %224 = vmax.xlane.f32.xlu1 %v223_v9  ;;  %v205_v10 = vld [vmem:[%s450_s21] sm:$0xff] }
  0x19   : > { %v218_v11 = vld [vmem:[%s455_s24] sm:$0xff]  ;;  %v206_v13 = vld [vmem:[%s450_s21 + $0x8] sm:$0xff] }
  0x1a   : > { %v219_v15 = vld [vmem:[%s455_s24 + $0x8] sm:$0xff] }
  0xa1   : > { %v209_v12 = vpop.xlane.xlu0 %208  ;;  %v222_v14 = vpop.xlane.xlu1 %221 }
  0xa2   : > { %v213_v16 = vadd.f32 %v209_v12, %v205_v10  ;;  %v226_v17 = vmax.f32 %v218_v11, %v222_v14 }
  0xa4   : > { %216 = vst.msk [vmem:[%s450_s21] sm:$0xff] %vm196_vm0, %v213_v16  ;;  %228 = vst.msk [vmem:[%s455_s24] sm:$0xff] %vm196_vm0, %v226_v17 }
  0xa5   : > { %v212_v18 = vpop.xlane.xlu0 %211  ;;  %v225_v19 = vpop.xlane.xlu1 %224 }
  0xa6   : > { %v214_v20 = vadd.f32 %v212_v18, %v206_v13  ;;  %v227_v21 = vmax.f32 %v219_v15, %v225_v19 }
  0xa8   : > { %217 = vst.msk [vmem:[%s450_s21 + $0x8] sm:$0xff] %vm196_vm0, %v214_v20  ;;  %229 = vst.msk [vmem:[%s455_s24 + $0x8] sm:$0xff] %vm196_vm0, %v227_v21 }
  0xab   : > { %v233_v22 = vld [vmem:[%s450_s21] sm:$0xff] }
  0xac   : > { %v235_v24 = vmul.f32 0.00390625, %v233_v22 }
  0xae   : > { %237 = vst.msk [vmem:[%s450_s21] sm:$0xff] %vm196_vm0, %v235_v24 }
  0xaf   : > { %v234_v23 = vld [vmem:[%s450_s21 + $0x8] sm:$0xff] }
  0xb0   : > { %v236_v25 = vmul.f32 0.00390625, %v234_v23 }
  0xb2   : > { %238 = vst.msk [vmem:[%s450_s21 + $0x8] sm:$0xff] %vm196_vm0, %v236_v25 }
  0xb3 PF: > { %s13_s11 = sadd.s32 1, %s407_s11   ;;  %s495_s9 = smov %s403_s10 }
  0xb4   : > { %p10_p5 = scmp.ge.s32.totalorder %s13_s11, 4   ;;  %s496_s10 = smov %s498_s12 }
  0xb6   :  { %12 = sbr.rel (!%p10_p5) target bundleno = 2 (0x2), region = 74 }

// kernel: channel_attention.3
= control target key start
LH: loop header
LB: loop body
LE: loop exit
PB: predicated region body
PF: predicated region fallthrough
CT: control target
= control target key end

     0   :  { %v474_v2 = vmov 0.0|0.0   ;;  %vm475_vm0 = vmmov 0   ;;  %v476_v4 = vmov 0.0   ;;  %s553_s0 = inlined_call_operand.vmem [shape: f32[2,16], index: 0, kind: input, shape index: {}]   ;;  %s554_s1 = inlined_call_operand.vmem [shape: f32[2,16], index: 1, kind: input, shape index: {}]   ;;  %s555_s2 = inlined_call_operand.vmem [shape: f32[16,2], index: 2, kind: input, shape index: {}]   ;;  %s556_s3 = inlined_call_operand.vmem [shape: f32[2,16], index: 3, kind: input, shape index: {}]   ;;  %s557_s4 = inlined_call_operand.vmem [shape: f32[1,16], index: 4, kind: input, shape index: {}]   ;;  %s558_s5 = inlined_call_operand.vmem [shape: f32[1,16], index: 5, kind: input, shape index: {}]   ;;  %s559_s6 = inlined_call_operand.hbm [shape: f32[2,16], index: 6, kind: output, shape index: {}]  }
   0x1   :  { %v24_v0 = vld [vmem:[%s555_s2] sm:$0xff]  ;;  %v25_v1 = vld [vmem:[%s555_s2 + $0x8] sm:$0xff]  ;;  %432 = vmatprep.subr.bf16.mxu1 %v474_v2  ;;  %412 = vmatprep.mubr.msk.f32.mxu1 %vm475_vm0, %v476_v4 }
   0x2   :  { %v433_v3 = vpack.c.bf16 %v25_v1, %v24_v0 }
   0x3   :  { %11 = vsyncpa [#allocation3], 0  ;;  %422 = vmatprep.subr.mxu0 %v476_v4  ;;  %424 = vmatprep.mubr.msk.f32.mxu0 %vm475_vm0, %v476_v4  ;;  %v27_v5 = vld [vmem:[%s553_s0] sm:$0x3]  ;;  %vm28_vm1 = vcmask 130048   ;;  %vm182_vm2 = vcmask 1041408  }
   0x4   :  { %434 = vmatpush3.bf16.msra.mxu1 %v433_v3  ;;  %v103_v6 = vld [vmem:[%s554_s1] sm:$0x3]  ;;  %vm178_vm3 = vcmask 15360   ;;  %vm335_vm4 = vcmask 123904   ;;  %s477_s7 = smov [#allocation2]  }
   0x5   :  { %435 = vmatprep.subr.bf16.mxu1 %v474_v2  ;;  %v26_v7 = vld [vmem:[%s556_s3] sm:$0x3]  ;;  %s381_s8 = sshll.u32 %s477_s7, 4  ;;  %s382_s8 = int_to_ptr.vmem [resolvable:$true] %s381_s8 }
   0x6   :  { %423 = vmatpush3.msk.msra.mxu0 %vm182_vm2, %v26_v7  ;;  %v396_v40 = vld [vmem:[%s557_s4] ss:$0 sm:$0xff]  ;;  %s450_s9 = scalar_lea.vmem %s382_s8, 32  ;;  %p455_p1 = scmp.lt.s32.totalorder %s382_s8, %s382_s8 }
   0x7   :  { %413 = vmatmul.mubr.msk.f32.vlgmr.msra.gmra.mrb[0].mxu1 %vm28_vm1, %v27_v5  ;;  %427 = vmatprep.subr.mxu0 %v476_v4  ;;  %v397_v42 = vld [vmem:[%s558_s5] ss:$0 sm:$0xff]  ;;  %p451_p0 = scmp.ne.s32.totalorder %s382_s8, %s450_s9  ;;  %p456_p2 = scmp.lt.s32.totalorder %s450_s9, %s450_s9 }
   0x8   :  { %437 = vmatpush3.bf16.msra.mxu1 %v433_v3  ;;  %419 = vmatprep.mubr.msk.f32.mxu1 %vm475_vm0, %v476_v4 }
   0x9   :  { %p457_p3 = por %p456_p2, %p455_p1 }
   0xb   :  { %420 = vmatmul.mubr.msk.f32.vlgmr.msra.gmra.mrb[2].mxu1 %vm28_vm1, %v103_v6  ;;  %p458_p4 = pnand %p457_p3, %p451_p0 }
  0xda   :  { %v98_v8 = vpop.f32.mrb[0].mxu1 }
  0xdb   :  { %v414_v9 = vpop.f32.mrb[1].mxu1  ;;  %v102_v13 = vmax.f32 %v98_v8, 0.0 }
  0xde   :  { %v173_v10 = vpop.f32.mrb[2].mxu1 }
  0xdf   :  { %v177_v11 = vmax.f32 %v173_v10, 0.0  ;;  %v421_v12 = vpop.f32.mrb[3].mxu1 }
  0xe1   :  { %425 = vmatmul.mubr.msk.f32.vlgmr.msra.gmra.mrb[0].mxu0 %vm178_vm3, %v177_v11 }
  0xe2   :  { %428 = vmatpush3.msk.msra.mxu0 %vm182_vm2, %v26_v7  ;;  %429 = vmatprep.mubr.msk.f32.mxu0 %vm475_vm0, %v476_v4 }
  0xe9   :  { %430 = vmatmul.mubr.msk.f32.vlgmr.msra.gmra.mrb[0].mxu0 %vm178_vm3, %v102_v13 }
 0x1bc   :  { %v325_v14 = vpop.f32.mrb[0].mxu0 }
 0x1bd   :  { %v395_v15 = vmul.f32 -1.442695, %v325_v14  ;;  %v431_v16 = vpop.f32.mrb[1].mxu0 }
 0x1bf   :  { %444 = vpow2.f32 %v395_v15 }
 0x1c9   :  { %v445_v17 = vpop.eup %444 }
 0x1ca   :  { %v332_v18 = vadd.f32 1.0, %v445_v17 }
 0x1cc   :  { %446 = vrcp.f32 %v332_v18 }
 0x1d6   :  { %v447_v19 = vpop.eup %446 }
 0x1d7   :  { %v336_v20 = vsel %vm335_vm4, %v447_v19, 0.0 }
 0x1d8   :  { %v337_v21 = vrot.slane %v336_v20, 4 }
 0x1da   :  { %v338_v22 = vadd.f32 %v337_v21, %v336_v20 }
 0x1dc   :  { %v339_v23 = vrot.slane %v338_v22, 2 }
 0x1de   :  { %v340_v24 = vadd.f32 %v339_v23, %v338_v22 }
 0x1e0   :  { %v341_v25 = vrot.slane %v340_v24, 1 }
 0x1e2   :  { %v342_v26 = vadd.f32 %v341_v25, %v340_v24 }
 0x1e4   :  { %v344_v27 = vmul.f32 0.5, %v342_v26 }
 0x1e6   :  { %v345_v28 = vsub.f32 %v447_v19, %v344_v27 }
 0x1e8   :  { %v346_v29 = vmul.f32 %v345_v28, %v345_v28 }
 0x1ea   :  { %v347_v30 = vsel %vm335_vm4, %v346_v29, 0.0 }
 0x1eb   :  { %v348_v31 = vrot.slane %v347_v30, 4 }
 0x1ed   :  { %v349_v32 = vadd.f32 %v348_v31, %v347_v30 }
 0x1ef   :  { %v350_v33 = vrot.slane %v349_v32, 2 }
 0x1f1   :  { %v351_v34 = vadd.f32 %v350_v33, %v349_v32 }
 0x1f3   :  { %v352_v35 = vrot.slane %v351_v34, 1 }
 0x1f5   :  { %v353_v36 = vadd.f32 %v352_v35, %v351_v34 }
 0x1f7   :  { %v354_v37 = vmul.f32 0.5, %v353_v36 }
 0x1f9   :  { %v355_v38 = vadd.f32 1e-05, %v354_v37 }
 0x1fb   :  { %448 = vrsqrt.f32 %v355_v38 }
 0x205   :  { %v449_v39 = vpop.eup %448 }
 0x206   :  { %v357_v41 = vmul.f32 %v449_v39, %v345_v28 }
 0x208   :  { %v365_v43 = vmul.f32 %v396_v40, %v357_v41 }
 0x20a   :  { %v373_v44 = vadd.f32 %v397_v42, %v365_v43 }
 0x20c   :  { %374 = vst.msk [vmem:[#allocation2] sm:$0x3] %vm335_vm4, %v373_v44 }
 0x20d   :  { %461 = shalt.err (!%p458_p4)
}
 0x20e   :  { %s462_s11 = scalar_lea.hbm %s559_s6, 32 }
 0x20f   :  { %p463_p5 = scmp.ne.s32.totalorder %s559_s6, %s462_s11  ;;  %p466_p6 = scmp.lt.u32.totalorder %s462_s11, %s559_s6 }
 0x211   :  { %p468_p7 = pnand %p466_p6, %p463_p5 }
 0x213   :  { %471 = shalt.err (!%p468_p7)
}
 0x214   :  { %384 = dma.vmem_to_hbm [thread:$0]  %s382_s8, 32, %s559_s6, [#allocation3]  }
 0x215   :  { %472 = dma.done.wait [#allocation3], 32  }
 0x216   :  { %473 = vsyncadd [#allocation3], 4294967264 }
 0x217   :  { %388 = vsyncpa [#allocation3], 1 }

</bundles_post_ra>
